<compile_context>
chip_gen: v7x
topology: tpu7x:2x2x1
jax: 0.10.0
libtpu: 0.0.40
codegen_flags: <defaults>
</compile_context>

<pallas_src>
import functools

import jax
import jax.numpy as jnp
from jax import lax
from jax.experimental import pallas as pl
from jax.experimental.pallas import tpu as pltpu

_LANES = 128
_SUBLANES = 8
# Byte budget per input block (per pipeline buffer). 2 MiB -> 2048 rows for
# f32 C=2, 4096 rows for bf16 C=2. Two inputs double-buffered = 8 MiB of
# pipeline VMEM, comfortably under every chip's ceiling once vmem_limit_bytes
# is raised, and large enough to sit at ~86%+ of the HBM roofline.
_TILE_BYTES = 2 * 1024 * 1024


def _round_up(x, m):
    return (x + m - 1) // m * m


def _epe_kernel(pred_ref, label_ref, out_ref, *,
                eps, inv_hw, hw, num_channels, tile_rows, tiles_per_split,
                need_mask):
    # pred_ref / label_ref: (1, C, tile_rows, 128) VMEM tiles.
    # out_ref: (1, 8, 128) resident accumulator for this (batch, split).
    k = pl.program_id(2)

    @pl.when(k == 0)
    def _init():
        out_ref[...] = jnp.zeros_like(out_ref)

    # Channel reduction as an unrolled loop of VPU multiply-adds (C is tiny,
    # e.g. 2 for optical flow) -- no sublane-axis XLU reduce needed.
    sq = None
    for c in range(num_channels):
        d = pred_ref[0, c].astype(jnp.float32) - label_ref[0, c].astype(jnp.float32)
        sq = d * d if sq is None else sq + d * d
    epe = jnp.sqrt(sq + eps)                       # (tile_rows, 128), EUP sqrt

    def fold(x):
        # Fold the tile into the (8, 128) accumulator with plain VPU adds;
        # the expensive cross-lane reduce is deferred to the wrapper.
        return jnp.sum(x.reshape(tile_rows // _SUBLANES, _SUBLANES, _LANES), axis=0)

    if need_mask:
        # Only the boundary tile (and any fully-out-of-range redundant tile)
        # pays for the iota/compare/select mask; interior tiles take the
        # plain-add branch.
        s = pl.program_id(1)
        row0 = (s * tiles_per_split + k) * tile_rows
        has_pad = (row0 + tile_rows) * _LANES > hw

        @pl.when(has_pad)
        def _masked():
            rid = lax.broadcasted_iota(jnp.int32, epe.shape, 0)
            lid = lax.broadcasted_iota(jnp.int32, epe.shape, 1)
            flat = (row0 + rid) * _LANES + lid
            out_ref[0] += fold(jnp.where(flat < hw, epe, 0.0))

        @pl.when(jnp.logical_not(has_pad))
        def _plain():
            out_ref[0] += fold(epe)
    else:
        out_ref[0] += fold(epe)

    @pl.when(k == tiles_per_split - 1)
    def _finalize():
        out_ref[0] = out_ref[0] * inv_hw


def _default_num_splits(batch):
    if batch > 1:
        return 1
    # Only v7x has 2 TensorCores; on 1-TC chips (v5e/v6e) a spatial split is
    # pure overhead (extra finalize + redundant masked tile).
    try:
        kind = jax.devices()[0].device_kind.lower()
    except Exception:
        return 1
    return 2 if "v7" in kind else 1


def epe_loss(pred, label, eps: float = 0.0, *, num_splits=None,
             max_tile_rows=None):
    """Pallas EpeLoss.forward. pred/label: (B, C, H, W) -> (B,) float32."""
    assert pred.shape == label.shape
    B, C, H, W = pred.shape
    HW = H * W

    if num_splits is None:
        num_splits = _default_num_splits(B)
    num_splits = max(1, int(num_splits))

    # Pad the flattened spatial axis only up to one (8, 128) vreg so the
    # (B, C, rows, 128) reshape is well-formed; for typical flow resolutions
    # this is a no-op (no extra HBM pass).  Tile-level remainders are handled
    # by Pallas partial blocks + the in-kernel mask instead of padding.
    hw_pad = _round_up(HW, _SUBLANES * _LANES)
    rows = hw_pad // _LANES                       # multiple of 8

    itemsize = jnp.dtype(pred.dtype).itemsize
    budget_rows = max(
        _SUBLANES,
        (_TILE_BYTES // (C * _LANES * itemsize)) // _SUBLANES * _SUBLANES)
    tile_rows = min(budget_rows, _round_up(pl.cdiv(rows, num_splits), _SUBLANES))
    if max_tile_rows is not None:
        # Caller override: round up to a sublane multiple (correctness guard).
        tile_rows = min(tile_rows,
                        max(_SUBLANES, _round_up(int(max_tile_rows), _SUBLANES)))

    total_tiles = pl.cdiv(rows, tile_rows)
    tiles_per_split = pl.cdiv(total_tiles, num_splits)
    # Mask needed iff the grid's element coverage exceeds the true HW count.
    need_mask = (num_splits * tiles_per_split * tile_rows * _LANES) != HW

    p = pred.reshape(B, C, HW)
    l = label.reshape(B, C, HW)
    if hw_pad != HW:
        pad = ((0, 0), (0, 0), (0, hw_pad - HW))
        p = jnp.pad(p, pad)
        l = jnp.pad(l, pad)
    p = p.reshape(B, C, rows, _LANES)
    l = l.reshape(B, C, rows, _LANES)

    kernel = functools.partial(
        _epe_kernel,
        eps=float(eps), inv_hw=1.0 / float(HW), hw=int(HW),
        num_channels=C, tile_rows=tile_rows, tiles_per_split=tiles_per_split,
        need_mask=need_mask,
    )

    last_tile = total_tiles - 1

    def in_map(b, s, k):
        # Clamp redundant trailing tiles (possible when num_splits does not
        # divide total_tiles) to the last real tile; their contribution is
        # zeroed by the in-kernel mask.
        t = s * tiles_per_split + k
        return (b, 0, jnp.minimum(t, last_tile), 0)

    def out_map(b, s, k):
        return (b * num_splits + s, 0, 0)

    in_block_bytes = C * tile_rows * _LANES * itemsize
    # 2 inputs x 2 pipeline buffers, with ~2x headroom for elementwise
    # temporaries; >= 32 MiB so v5e's 16 MiB scoped default is lifted, capped
    # at 48 MiB to stay well inside v7x's 64 MiB physical VMEM.
    vmem_limit = int(min(48 * 2**20, max(32 * 2**20, 4 * 2 * 2 * in_block_bytes)))

    out = pl.pallas_call(
        kernel,
        out_shape=jax.ShapeDtypeStruct((B * num_splits, _SUBLANES, _LANES),
                                       jnp.float32),
        grid_spec=pltpu.PrefetchScalarGridSpec(
            num_scalar_prefetch=0,
            grid=(B, num_splits, tiles_per_split),
            in_specs=[
                pl.BlockSpec((1, C, tile_rows, _LANES), in_map),
                pl.BlockSpec((1, C, tile_rows, _LANES), in_map),
            ],
            out_specs=pl.BlockSpec((1, _SUBLANES, _LANES), out_map),
        ),
        compiler_params=pltpu.CompilerParams(
            dimension_semantics=("parallel", "parallel", "arbitrary"),
            vmem_limit_bytes=vmem_limit,
        ),
    )(p, l)

    # Each (batch, split) slab holds its partial mean spread over the (8, 128)
    # accumulator cells; the tiny final reduction happens in plain XLA.
    return jnp.sum(out.reshape(B, -1), axis=1)


def _epe_loss_ref(pred, label, eps: float = 0.0):
    # Pure-JAX reference mirroring the PyTorch module exactly.
    pred = pred.astype(jnp.float32)
    label = label.astype(jnp.float32)
    loss = jnp.sqrt(jnp.sum((pred - label) ** 2, axis=1) + eps)
    return jnp.mean(loss.reshape(loss.shape[0], -1), axis=1)


if __name__ == "__main__":
    key = jax.random.PRNGKey(0)

    tests = [
        # (B, C, H, W, eps, dtype, kwargs)
        (2, 2, 16, 16, 0.0, jnp.float32, {}),               # single masked tile
        (1, 2, 20, 20, 1e-3, jnp.float32, {}),               # HW not /128, B=1 split path
        (2, 2, 32, 128, 1e-3, jnp.float32, {"max_tile_rows": 8}),   # exact tiling, multi-step
        (2, 2, 32, 128, 0.0, jnp.float32, {"max_tile_rows": 24}),   # partial last block + gated mask
        (2, 2, 16, 32, 1e-3, jnp.bfloat16, {}),              # bf16 inputs
    ]

    for i, (B, C, H, W, eps, dtype, kwargs) in enumerate(tests):
        key, k1, k2 = jax.random.split(key, 3)
        pred = jax.random.normal(k1, (B, C, H, W), dtype=jnp.float32).astype(dtype)
        label = jax.random.normal(k2, (B, C, H, W), dtype=jnp.float32).astype(dtype)

        out = epe_loss(pred, label, eps=eps, **kwargs)
        out = jax.block_until_ready(out)

        ref = _epe_loss_ref(pred, label, eps=eps)
        assert out.shape == (B,), (i, out.shape)
        assert jnp.allclose(out, ref, atol=1e-5, rtol=1e-5), (i, out, ref)

    print("KERNEL_OK")
</pallas_src>

<mosaic_0001>
module attributes {stable_mosaic.version = 11 : i64} {
  func.func @_epe_kernel(%arg0: i32, %arg1: i32, %arg2: i32, %arg3: memref<1x2x8x128xf32, #tpu.memory_space<vmem>>, %arg4: memref<1x2x8x128xf32, #tpu.memory_space<vmem>>, %arg5: memref<1x8x128xf32, #tpu.memory_space<vmem>>) attributes {dimension_semantics = [#tpu.dimension_semantics<parallel>, #tpu.dimension_semantics<parallel>, #tpu.dimension_semantics<arbitrary>], iteration_bounds = array<i64: 2, 1, 1>, scalar_prefetch = 0 : i64, scratch_operands = 0 : i64, tpu.core_type = #tpu.core_type<tc>, window_params = [{transform_indices = @transform_0, window_bounds = array<i64: 1, 2, 8, 128>}, {transform_indices = @transform_1, window_bounds = array<i64: 1, 2, 8, 128>}, {transform_indices = @transform_2, window_bounds = array<i64: 1, 8, 128>}]} {
    %c0_i32 = arith.constant 0 : i32
    %0 = arith.cmpi eq, %arg2, %c0_i32 : i32
    %1 = arith.extui %0 : i1 to i32
    %c0_i32_0 = arith.constant 0 : i32
    %2 = arith.cmpi ne, %1, %c0_i32_0 : i32
    scf.if %2 {
      %cst_20 = arith.constant 0.000000e+00 : f32
      %33 = vector.broadcast %cst_20 : f32 to vector<1x8x128xf32>
      %c0_21 = arith.constant 0 : index
      %c0_22 = arith.constant 0 : index
      %c0_23 = arith.constant 0 : index
      %34 = vector.load %arg5[%c0_21, %c0_22, %c0_23] : memref<1x8x128xf32, #tpu.memory_space<vmem>>, vector<1x8x128xf32>
      tpu.vector_store %arg5[%c0_21, %c0_22, %c0_23], %33 {strides = array<i32>} : memref<1x8x128xf32, #tpu.memory_space<vmem>>, vector<1x8x128xf32>,
    } else {
    }
    %c0 = arith.constant 0 : index
    %c0_1 = arith.constant 0 : index
    %c0_2 = arith.constant 0 : index
    %c0_3 = arith.constant 0 : index
    %3 = vector.load %arg3[%c0, %c0_1, %c0_2, %c0_3] : memref<1x2x8x128xf32, #tpu.memory_space<vmem>>, vector<1x1x8x128xf32>
    %4 = vector.shape_cast %3 : vector<1x1x8x128xf32> to vector<8x128xf32>
    %c0_4 = arith.constant 0 : index
    %c0_5 = arith.constant 0 : index
    %c0_6 = arith.constant 0 : index
    %c0_7 = arith.constant 0 : index
    %5 = vector.load %arg4[%c0_4, %c0_5, %c0_6, %c0_7] : memref<1x2x8x128xf32, #tpu.memory_space<vmem>>, vector<1x1x8x128xf32>
    %6 = vector.shape_cast %5 : vector<1x1x8x128xf32> to vector<8x128xf32>
    %7 = arith.subf %4, %6 : vector<8x128xf32>
    %8 = arith.mulf %7, %7 : vector<8x128xf32>
    %c0_8 = arith.constant 0 : index
    %c1 = arith.constant 1 : index
    %c0_9 = arith.constant 0 : index
    %c0_10 = arith.constant 0 : index
    %9 = vector.load %arg3[%c0_8, %c1, %c0_9, %c0_10] : memref<1x2x8x128xf32, #tpu.memory_space<vmem>>, vector<1x1x8x128xf32>
    %10 = vector.shape_cast %9 : vector<1x1x8x128xf32> to vector<8x128xf32>
    %c0_11 = arith.constant 0 : index
    %c1_12 = arith.constant 1 : index
    %c0_13 = arith.constant 0 : index
    %c0_14 = arith.constant 0 : index
    %11 = vector.load %arg4[%c0_11, %c1_12, %c0_13, %c0_14] : memref<1x2x8x128xf32, #tpu.memory_space<vmem>>, vector<1x1x8x128xf32>
    %12 = vector.shape_cast %11 : vector<1x1x8x128xf32> to vector<8x128xf32>
    %13 = arith.subf %10, %12 : vector<8x128xf32>
    %14 = arith.mulf %13, %13 : vector<8x128xf32>
    %15 = arith.addf %8, %14 : vector<8x128xf32>
    %cst = arith.constant 0.000000e+00 : f32
    %16 = vector.broadcast %cst : f32 to vector<8x128xf32>
    %17 = arith.addf %15, %16 : vector<8x128xf32>
    %18 = math.sqrt %17 : vector<8x128xf32>
    %c1_i32 = arith.constant 1 : i32
    %19 = arith.muli %arg1, %c1_i32 : i32
    %20 = arith.addi %19, %arg2 : i32
    %c8_i32 = arith.constant 8 : i32
    %21 = arith.muli %20, %c8_i32 : i32
    %c8_i32_15 = arith.constant 8 : i32
    %22 = arith.addi %21, %c8_i32_15 : i32
    %c128_i32 = arith.constant 128 : i32
    %23 = arith.muli %22, %c128_i32 : i32
    %c256_i32 = arith.constant 256 : i32
    %24 = arith.cmpi sgt, %23, %c256_i32 : i32
    %25 = arith.extui %24 : i1 to i32
    %c0_i32_16 = arith.constant 0 : i32
    %26 = arith.cmpi ne, %25, %c0_i32_16 : i32
    scf.if %26 {
      %33 = tpu.iota {dimensions = array<i32: 0>} : vector<8x128xi32>
      %34 = tpu.iota {dimensions = array<i32: 1>} : vector<8x128xi32>
      %35 = vector.broadcast %21 : i32 to vector<8x128xi32>
      %36 = arith.addi %35, %33 : vector<8x128xi32>
      %c128_i32_20 = arith.constant 128 : i32
      %37 = vector.broadcast %c128_i32_20 : i32 to vector<8x128xi32>
      %38 = arith.muli %36, %37 : vector<8x128xi32>
      %39 = arith.addi %38, %34 : vector<8x128xi32>
      %c0_21 = arith.constant 0 : index
      %c0_22 = arith.constant 0 : index
      %c0_23 = arith.constant 0 : index
      %40 = vector.load %arg5[%c0_21, %c0_22, %c0_23] : memref<1x8x128xf32, #tpu.memory_space<vmem>>, vector<1x8x128xf32>
      %41 = vector.shape_cast %40 : vector<1x8x128xf32> to vector<8x128xf32>
      %c256_i32_24 = arith.constant 256 : i32
      %42 = vector.broadcast %c256_i32_24 : i32 to vector<8x128xi32>
      %43 = arith.cmpi slt, %39, %42 : vector<8x128xi32>
      %cst_25 = arith.constant 0.000000e+00 : f32
      %44 = vector.broadcast %cst_25 : f32 to vector<8x128xf32>
      %45 = arith.select %43, %18, %44 : vector<8x128xi1>, vector<8x128xf32>
      %46 = vector.shape_cast %45 : vector<8x128xf32> to vector<1x8x128xf32>
      %cst_26 = arith.constant dense<0.000000e+00> : vector<8x128xf32>
      %47 = vector.multi_reduction <add>, %46, %cst_26 [0] : vector<1x8x128xf32> to vector<8x128xf32>
      %48 = arith.addf %41, %47 : vector<8x128xf32>
      %c0_27 = arith.constant 0 : index
      %c0_28 = arith.constant 0 : index
      %c0_29 = arith.constant 0 : index
      %49 = vector.load %arg5[%c0_27, %c0_28, %c0_29] : memref<1x8x128xf32, #tpu.memory_space<vmem>>, vector<1x8x128xf32>
      %50 = vector.shape_cast %49 : vector<1x8x128xf32> to vector<8x128xf32>
      %51 = vector.shape_cast %48 : vector<8x128xf32> to vector<1x8x128xf32>
      tpu.vector_store %arg5[%c0_27, %c0_28, %c0_29], %51 {strides = array<i32>} : memref<1x8x128xf32, #tpu.memory_space<vmem>>, vector<1x8x128xf32>,
    } else {
    }
    %true = arith.constant true
    %27 = arith.xori %24, %true : i1
    %28 = arith.extui %27 : i1 to i32
    %c0_i32_17 = arith.constant 0 : i32
    %29 = arith.cmpi ne, %28, %c0_i32_17 : i32
    scf.if %29 {
      %c0_20 = arith.constant 0 : index
      %c0_21 = arith.constant 0 : index
      %c0_22 = arith.constant 0 : index
      %33 = vector.load %arg5[%c0_20, %c0_21, %c0_22] : memref<1x8x128xf32, #tpu.memory_space<vmem>>, vector<1x8x128xf32>
      %34 = vector.shape_cast %33 : vector<1x8x128xf32> to vector<8x128xf32>
      %35 = vector.shape_cast %18 : vector<8x128xf32> to vector<1x8x128xf32>
      %cst_23 = arith.constant dense<0.000000e+00> : vector<8x128xf32>
      %36 = vector.multi_reduction <add>, %35, %cst_23 [0] : vector<1x8x128xf32> to vector<8x128xf32>
      %37 = arith.addf %34, %36 : vector<8x128xf32>
      %c0_24 = arith.constant 0 : index
      %c0_25 = arith.constant 0 : index
      %c0_26 = arith.constant 0 : index
      %38 = vector.load %arg5[%c0_24, %c0_25, %c0_26] : memref<1x8x128xf32, #tpu.memory_space<vmem>>, vector<1x8x128xf32>
      %39 = vector.shape_cast %38 : vector<1x8x128xf32> to vector<8x128xf32>
      %40 = vector.shape_cast %37 : vector<8x128xf32> to vector<1x8x128xf32>
      tpu.vector_store %arg5[%c0_24, %c0_25, %c0_26], %40 {strides = array<i32>} : memref<1x8x128xf32, #tpu.memory_space<vmem>>, vector<1x8x128xf32>,
    } else {
    }
    %c0_i32_18 = arith.constant 0 : i32
    %30 = arith.cmpi eq, %arg2, %c0_i32_18 : i32
    %31 = arith.extui %30 : i1 to i32
    %c0_i32_19 = arith.constant 0 : i32
    %32 = arith.cmpi ne, %31, %c0_i32_19 : i32
    scf.if %32 {
      %c0_20 = arith.constant 0 : index
      %c0_21 = arith.constant 0 : index
      %c0_22 = arith.constant 0 : index
      %33 = vector.load %arg5[%c0_20, %c0_21, %c0_22] : memref<1x8x128xf32, #tpu.memory_space<vmem>>, vector<1x8x128xf32>
      %34 = vector.shape_cast %33 : vector<1x8x128xf32> to vector<8x128xf32>
      %cst_23 = arith.constant 3.906250e-03 : f32
      %35 = vector.broadcast %cst_23 : f32 to vector<8x128xf32>
      %36 = arith.mulf %34, %35 : vector<8x128xf32>
      %c0_24 = arith.constant 0 : index
      %c0_25 = arith.constant 0 : index
      %c0_26 = arith.constant 0 : index
      %37 = vector.load %arg5[%c0_24, %c0_25, %c0_26] : memref<1x8x128xf32, #tpu.memory_space<vmem>>, vector<1x8x128xf32>
      %38 = vector.shape_cast %37 : vector<1x8x128xf32> to vector<8x128xf32>
      %39 = vector.shape_cast %36 : vector<8x128xf32> to vector<1x8x128xf32>
      tpu.vector_store %arg5[%c0_24, %c0_25, %c0_26], %39 {strides = array<i32>} : memref<1x8x128xf32, #tpu.memory_space<vmem>>, vector<1x8x128xf32>,
    } else {
    }
    return
  }
  func.func @transform_0(%arg0: i32, %arg1: i32, %arg2: i32) -> (i32, i32, i32, i32) {
    %c1_i32 = arith.constant 1 : i32
    %0 = arith.muli %arg1, %c1_i32 : i32
    %1 = arith.addi %0, %arg2 : i32
    %c0_i32 = arith.constant 0 : i32
    %2 = arith.minsi %1, %c0_i32 : i32
    %c0_i32_0 = arith.constant 0 : i32
    %c0_i32_1 = arith.constant 0 : i32
    %c0_i32_2 = arith.constant 0 : i32
    return %arg0, %c0_i32_0, %2, %c0_i32_1 : i32, i32, i32, i32
  }
  func.func @transform_1(%arg0: i32, %arg1: i32, %arg2: i32) -> (i32, i32, i32, i32) {
    %c1_i32 = arith.constant 1 : i32
    %0 = arith.muli %arg1, %c1_i32 : i32
    %1 = arith.addi %0, %arg2 : i32
    %c0_i32 = arith.constant 0 : i32
    %2 = arith.minsi %1, %c0_i32 : i32
    %c0_i32_0 = arith.constant 0 : i32
    %c0_i32_1 = arith.constant 0 : i32
    %c0_i32_2 = arith.constant 0 : i32
    return %arg0, %c0_i32_0, %2, %c0_i32_1 : i32, i32, i32, i32
  }
  func.func @transform_2(%arg0: i32, %arg1: i32, %arg2: i32) -> (i32, i32, i32) {
    %c1_i32 = arith.constant 1 : i32
    %0 = arith.muli %arg0, %c1_i32 : i32
    %1 = arith.addi %0, %arg1 : i32
    %c0_i32 = arith.constant 0 : i32
    %c0_i32_0 = arith.constant 0 : i32
    %c0_i32_1 = arith.constant 0 : i32
    return %1, %c0_i32, %c0_i32_0 : i32, i32, i32
  }
}

</mosaic_0001>

<bundles_post_ra>
// kernel: tpu_custom_call.1
= control target key start
LH: loop header
LB: loop body
LE: loop exit
PB: predicated region body
PF: predicated region fallthrough
CT: control target
= control target key end

     0   :  { %7 = vsyncpa [#allocation3], 0  ;;  %s935_s0 = inlined_call_operand.hbm [shape: f32[2,2,8,128], index: 0, kind: input, shape index: {}]   ;;  %s936_s1 = inlined_call_operand.hbm [shape: f32[2,2,8,128], index: 1, kind: input, shape index: {}]   ;;  %s937_s2 = inlined_call_operand.hbm [shape: f32[2,8,128], index: 2, kind: output, shape index: {}]  }
   0x1   :  { %9 = vsyncpa [#allocation3 + $0x1], 0 }
   0x2   :  { %10 = vsyncpa [#allocation6], 0 }
   0x3   :  { %12 = vsyncpa [#allocation6 + $0x1], 0 }
   0x4   :  { %13 = vsyncpa [#allocation4], 0 }
   0x5   :  { %15 = vsyncpa [#allocation4 + $0x1], 0  ;;  %s700_s9 = smov 0   ;;  %s702_s10 = smov 0  }
   0x6   :  { %s704_s11 = smov 0   ;;  %s706_s12 = smov 0  }
   0x7   :  { %s708_s13 = smov 0   ;;  %s710_s14 = smov 0  }
   0x8 LB: > { %s438_s15 = sadd.s32 4294967295, %s678_s14   ;;  %s439_s16 = sadd.s32 4294967294, %s678_s14   ;;  %s678_s14 = sphi %s710_s14, %s21_s14   ;;  %s674_s13 = sphi %s708_s13, %s955_s13   ;;  %s670_s12 = sphi %s706_s12, %s954_s12   ;;  %s666_s11 = sphi %s704_s11, %s953_s11   ;;  %s662_s10 = sphi %s702_s10, %s952_s10   ;;  %s658_s9 = sphi %s700_s9, %s951_s9  }
   0x9   : > { %s40_s17 = sadd.s32 1, %s674_s13  ;;  %s55_s18 = sadd.s32 1, %s666_s11 }
   0xa   : > { %p42_p0 = scmp.ge.s32.totalorder %s40_s17, 2  ;;  %p62_p1 = scmp.ne.s32.totalorder %s666_s11, %s662_s10 }
   0xb   : > { %p63_p2 = scmp.eq.s32.totalorder %s678_s14, 0  ;;  %p68_p3 = scmp.ne.s32.totalorder %s662_s10, %s658_s9 }
   0xc   : > { %s957_s17 = smov (%p42_p0, %s40_s17), 0  ;;  %p69_p5 = scmp.eq.s32.totalorder %s438_s15, 0 }
   0xd   : > { %p741_p4 = por %p63_p2, %p62_p1  ;;  %s50_s20 = ssub.s32 %s674_s13, %s957_s17 }
   0xe   : > { %p128_p6 = scmp.eq.s32.totalorder %s438_s15, 1  ;;  %p53_p7 = scmp.eq.s32.totalorder %s50_s20, 0 }
   0xf   : > { %p747_p8 = por %p69_p5, %p68_p3  ;;  %p134_p10 = scmp.eq.s32.totalorder %s439_s16, 1 }
  0x10   : > { %p751_p9 = por %p128_p6, %p62_p1  ;;  %p477_p13 = scmp.lt.s32.totalorder %s678_s14, 2 }
  0x11   : > { %s941_s21 = scalar_select %p747_p8, 1, 0 }
  0x12   : > { %s942_s22 = scalar_select %p751_p9, 1, 0 }
  0x13   : > { %s756_s23 = scalar_select %p53_p7, %s666_s11, %s55_s18  }
  0x14   : > { %p758_p11 = por %p134_p10, %p68_p3  ;;  %s765_s25 = sand.u32 1, %s666_s11  }
  0x15   : > { %s442_s26 = sshll.u32 %s765_s25, 4  ;;  %s458_s27 = sshll.u32 %s674_s13, 8 }
  0x16   : > { %s943_s24 = scalar_select %p758_p11, 1, 0 }
  0x17   : > { %s774_s30 = scalar_lea.hbm %s935_s0, %s458_s27  ;;  %s158_s3 = scalar_lea.vmem [#allocation2], %s442_s26 }
  0x18   : > { %s169_s4 = sshll.u32 %s158_s3, 4  ;;  %p782_p0 = pnand %p477_p13, %p741_p4  ;;  %s778_s4 = int_to_ptr.vmem [resolvable:$true] %s169_s4 }
  0x19   : > { %s155_s6 = scalar_lea.sflag [#allocation3], %s765_s25  ;;  %s532_s7 = scalar_lea.hbm %s774_s30, 256 }
  0x1a   : > { %p533_p2 = scmp.ne.s32.totalorder %s774_s30, %s532_s7  ;;  %p534_p3 = pneg %p782_p0 }
  0x1b   : > { %s537_s16 = scalar_lea.hbm %s935_s0, 512  ;;  %p538_p4 = scmp.lt.u32.totalorder %s774_s30, %s935_s0 }
  0x1c   : > { %p535_p5 = pnand %p534_p3, %p533_p2  ;;  %p539_p7 = scmp.lt.u32.totalorder %s537_s16, %s532_s7 }
  0x1d   : > { %p541_p13 = scmp.lt.u32.totalorder %s532_s7, %s774_s30 }
  0x1e   : > { %p536_p6 = pneg %p535_p5  ;;  %p540_p10 = por %p539_p7, %p538_p4 }
  0x20   : > { %p542_p12 = por %p541_p13, %p540_p10 }
  0x22   : > { %p543_p1 = pnand %p542_p12, %p536_p6 }
  0x24   : > { %546 = shalt.err (!%p543_p1)
}
  0x25   : > { %s547_s20 = scalar_lea.vmem %s778_s4, 256  ;;  %s680_s28 = smov [#allocation2]  }
  0x26   : > { %p548_p2 = scmp.ne.s32.totalorder %s778_s4, %s547_s20  ;;  %s552_s29 = sshll.u32 %s680_s28, 4  ;;  %s553_s29 = int_to_ptr.vmem [resolvable:$false] %s552_s29 }
  0x27   : > { %s554_s3 = scalar_lea.vmem %s553_s29, 512  ;;  %p555_p9 = scmp.lt.s32.totalorder %s778_s4, %s553_s29 }
  0x28   : > { %p550_p5 = pnand %p548_p2, %p534_p3  ;;  %p556_p4 = scmp.lt.s32.totalorder %s554_s3, %s547_s20 }
  0x2a   : > { %p551_p11 = pneg %p550_p5  ;;  %p557_p7 = por %p556_p4, %p555_p9 }
  0x2c   : > { %p558_p10 = pnand %p557_p7, %p551_p11 }
  0x2e   : > { %561 = shalt.err (!%p558_p10)
}
  0x2f   : > { %s681_s7 = smov 128   ;;  %s682_s8 = smov 8  }
  0x30   : > { %469 = dma.hbm_to_vmem [thread:$0]  (!%p782_p0), %s774_s30, 256, %s778_s4, %s155_s6, %s681_s7, %s681_s7, %s682_s8  }
  0x31   : > { %p202_p9 = scmp.lt.s32.totalorder %s678_s14, 3  ;;  %s824_s18 = scalar_lea.hbm %s936_s1, %s458_s27 }
  0x32   : > { %p945_p11 = scmp.ge.s32.totalorder %s678_s14, 1  ;;  %s183_s20 = scalar_lea.vmem [#allocation5], %s442_s26 }
  0x33   : > { %s194_s28 = sshll.u32 %s183_s20, 4  ;;  %s180_s30 = scalar_lea.sflag [#allocation6], %s765_s25  ;;  %s834_s28 = int_to_ptr.vmem [resolvable:$true] %s194_s28 }
  0x34   : > { %p828_p12 = pnand %p945_p11, %p202_p9  ;;  %s562_s4 = scalar_lea.hbm %s824_s18, 256 }
  0x35   : > { %p563_p1 = scmp.ne.s32.totalorder %s824_s18, %s562_s4  ;;  %s567_s29 = scalar_lea.hbm %s936_s1, 512 }
  0x36   : > { %p568_p2 = scmp.lt.u32.totalorder %s824_s18, %s936_s1  ;;  %p569_p5 = scmp.lt.u32.totalorder %s567_s29, %s562_s4 }
  0x37   : > { %p565_p6 = pnand %p563_p1, %p534_p3  ;;  %p571_p7 = scmp.lt.u32.totalorder %s562_s4, %s824_s18 }
  0x38   : > { %p570_p4 = por %p569_p5, %p568_p2 }
  0x39   : > { %p566_p13 = pneg %p565_p6 }
  0x3a   : > { %p572_p10 = por %p571_p7, %p570_p4 }
  0x3c   : > { %p573_p9 = pnand %p572_p10, %p566_p13 }
  0x3e   : > { %576 = shalt.err (!%p573_p9)
}
  0x3f   : > { %s577_s26 = scalar_lea.vmem %s834_s28, 256  ;;  %s683_s16 = smov [#allocation5]  }
  0x40   : > { %p578_p11 = scmp.ne.s32.totalorder %s834_s28, %s577_s26  ;;  %s582_s20 = sshll.u32 %s683_s16, 4  ;;  %s583_s20 = int_to_ptr.vmem [resolvable:$false] %s582_s20 }
  0x41   : > { %s584_s27 = scalar_lea.vmem %s583_s20, 512  ;;  %p585_p8 = scmp.lt.s32.totalorder %s834_s28, %s583_s20 }
  0x42   : > { %p580_p1 = pnand %p578_p11, %p534_p3  ;;  %p586_p2 = scmp.lt.s32.totalorder %s584_s27, %s577_s26 }
  0x44   : > { %p581_p6 = pneg %p580_p1  ;;  %p587_p5 = por %p586_p2, %p585_p8 }
  0x46   : > { %p588_p4 = pnand %p587_p5, %p581_p6 }
  0x48   : > { %591 = shalt.err (!%p588_p4)
}
  0x49   : > { %472 = dma.hbm_to_vmem [thread:$0]  (!%p782_p0), %s824_s18, 256, %s834_s28, %s180_s30, %s681_s7, %s681_s7, %s682_s8  }
  0x4a   : > { %206 = sbr.rel (%p828_p12) target bundleno = 124 (0x7c), region = 28  ;;  %s868_s4 = sand.u32 (!%p828_p12), 1, %s662_s10  }
  0x4b   : > { %s449_s6 = sshll.u32 (!%p828_p12), %s868_s4, 4  ;;  %s209_s29 = scalar_lea.sflag (!%p828_p12), [#allocation3], %s868_s4 }
  0x4c   : > { %s212_s5 = scalar_lea.vmem (!%p828_p12), [#allocation2], %s449_s6  ;;  %p947_p8 = scmp.ne.s32.totalorder (!%p828_p12), %s941_s21, 0 }
  0x51   : > { %645 = dma.done.wait (%p947_p8), %s209_s29, 256  }
  0x52   : > { %647 = vsyncadd (%p947_p8), %s209_s29, 4294967040  ;;  %s218_s25 = scalar_lea.sflag [#allocation6], %s868_s4  ;;  %s221_s7 = scalar_lea.vmem [#allocation5], %s449_s6 }
  0x53   : > { %649 = dma.done.wait (%p947_p8), %s218_s25, 256  }
  0x54   : > { %651 = vsyncadd (%p947_p8), %s218_s25, 4294967040  ;;  %v259_v0 = vld [vmem:[%s212_s5] sm:$0xff]  ;;  %v452_v2 = vld [vmem:[%s212_s5 + $0x8] sm:$0xff]  ;;  %v286_v8 = vlaneseq  ;;  %s451_s8 = sshll.u32 %s868_s4, 3  ;;  %s455_s21 = sshll.u32 %s670_s12, 7 }
  0x55   : > { %v260_v1 = vld [vmem:[%s221_s7] sm:$0xff]  ;;  %v453_v4 = vld [vmem:[%s221_s7 + $0x8] sm:$0xff]  ;;  %s246_s18 = scalar_lea.vmem [#allocation7], %s451_s8  ;;  %s886_s3 = scalar_lea.hbm %s937_s2, %s455_s21 }
  0x56   : > { %v261_v3 = vsub.f32 %v259_v0, %v260_v1  ;;  %v267_v5 = vsub.f32 %v452_v2, %v453_v4  ;;  %v287_v10 = vshrl.u32 %v286_v8, 7  ;;  %v289_v11 = vand.u32 127, %v286_v8  ;;  %s329_s19 = sshll.u32 %s246_s18, 4  ;;  %s315_s15 = scalar_lea.sflag [#allocation4], %s868_s4  ;;  %s888_s19 = int_to_ptr.vmem [resolvable:$true] %s329_s19 }
  0x57   : > { %s592_s26 = scalar_lea.vmem %s888_s19, 128  ;;  %p948_p3 = scmp.ne.s32.totalorder %s942_s22, 0 }
  0x58   : > { %v262_v6 = vmul.f32 %v261_v3, %v261_v3  ;;  %v268_v7 = vmul.f32 %v267_v5, %v267_v5  ;;  %v292_v12 = vmul.u32 128, %v287_v10  ;;  %p593_p0 = scmp.ne.s32.totalorder %s888_s19, %s592_s26  ;;  %s684_s12 = smov [#allocation7]  }
  0x59   : > { %s596_s16 = sshll.u32 %s684_s12, 4  ;;  %s597_s16 = int_to_ptr.vmem [resolvable:$false] %s596_s16 }
  0x5a   : > { %v269_v9 = vadd.f32 %v268_v7, %v262_v6  ;;  %v293_v13 = vadd.s32 %v292_v12, %v289_v11  ;;  %p594_p12 = pnand %p593_p0, %p948_p3  ;;  %s598_s20 = scalar_lea.vmem %s597_s16, 256 }
  0x5b   : > { %p599_p7 = scmp.lt.s32.totalorder %s888_s19, %s597_s16  ;;  %p600_p10 = scmp.lt.s32.totalorder %s598_s20, %s592_s26 }
  0x5c   : > { %530 = vrsqrt.f32 %v269_v9  ;;  %vm273_vm0 = vcmp.eq.f32.partialorder %v269_v9, inf  ;;  %v276_v15 = vand.u32 2147483648, %v269_v9  ;;  %vm275_vm1 = vcmp.eq.f32.partialorder %v269_v9, 0.0  ;;  %p595_p13 = pneg %p594_p12 }
  0x5d   : > { %vm295_vm2 = vcmp.lt.s32.totalorder %v293_v13, 256  ;;  %p601_p9 = por %p600_p10, %p599_p7 }
  0x5f   : > { %p602_p11 = pnand %p601_p9, %p595_p13 }
  0x66   : > { %v531_v14 = vpop.eup %530 }
  0x67   : > { %v272_v16 = vmul.f32 %v531_v14, %v269_v9 }
  0x69   : > { %v274_v17 = vsel %vm273_vm0, %v269_v9, %v272_v16 }
  0x6a   : > { %v277_v18 = vsel %vm275_vm1, %v276_v15, %v274_v17 }
  0x6b   : > { %v296_v19 = vsel %vm295_vm2, %v277_v18, 0.0 }
  0x6c   : > { %v312_v20 = vmul.f32 0.00390625, %v296_v19 }
  0x6e   : > { %313 = vst [vmem:[%s246_s18] sm:$0xff] %v312_v20 }
  0x6f   : > { %605 = shalt.err (!%p602_p11)
}
  0x70   : > { %s606_s27 = scalar_lea.hbm %s886_s3, 128  ;;  %s610_s29 = scalar_lea.hbm %s937_s2, 256 }
  0x71   : > { %p607_p1 = scmp.ne.s32.totalorder %s886_s3, %s606_s27  ;;  %p611_p5 = scmp.lt.u32.totalorder %s886_s3, %s937_s2 }
  0x72   : > { %p612_p4 = scmp.lt.u32.totalorder %s610_s29, %s606_s27  ;;  %p614_p0 = scmp.lt.u32.totalorder %s606_s27, %s886_s3 }
  0x73   : > { %p608_p6 = pnand %p607_p1, %p948_p3 }
  0x74   : > { %p613_p8 = por %p612_p4, %p611_p5 }
  0x75   : > { %p609_p2 = pneg %p608_p6 }
  0x76   : > { %p615_p12 = por %p614_p0, %p613_p8 }
  0x78   : > { %p616_p13 = pnand %p615_p12, %p609_p2 }
  0x7a   : > { %619 = shalt.err (!%p616_p13)
}
  0x7b   : > { %464 = dma.vmem_to_hbm [thread:$0]  (%p948_p3), %s888_s19, 128, %s886_s3, %s315_s15  }
  0x7c PF: > { %s341_s7 = sand.u32 1, %s658_s9   ;;  %p949_p7 = scmp.ne.s32.totalorder %s943_s24, 0 }
  0x7d   : > { %p950_p10 = scmp.ge.s32.totalorder %s678_s14, 2  ;;  %s342_s8 = scalar_lea.sflag [#allocation4], %s341_s7 }
  0x7f   : > { %p474_p9 = pnand %p950_p10, %p949_p7 }
  0x81   : > { %653 = dma.done.wait (!%p474_p9), %s342_s8, 128  }
  0x82   : > { %655 = vsyncadd (!%p474_p9), %s342_s8, 4294967168  ;;  %s21_s14 = sadd.s32 1, %s678_s14   ;;  %s951_s9 = smov %s662_s10 }
  0x83   : > { %p18_p11 = scmp.ge.s32.totalorder %s21_s14, 4   ;;  %s952_s10 = smov %s666_s11 }
  0x84   : > { %s953_s11 = smov %s756_s23  ;;  %s954_s12 = smov %s674_s13 }
  0x85   : > { %s955_s13 = smov %s957_s17  ;;  %20 = sbr.rel (!%p18_p11) target bundleno = 8 (0x8), region = 104 }
  0x8c   :  { %347 = vsyncpa [#allocation3], 1 }
  0x8d   :  { %349 = vsyncpa [#allocation3 + $0x1], 1 }
  0x8e   :  { %350 = vsyncpa [#allocation6], 1 }
  0x8f   :  { %352 = vsyncpa [#allocation6 + $0x1], 1 }
  0x90   :  { %353 = vsyncpa [#allocation4], 1 }
  0x91   :  { %355 = vsyncpa [#allocation4 + $0x1], 1 }

</bundles_post_ra>
